<compile_context>
chip_gen: v5e
topology: v5e:2x2
jax: 0.10.0
libtpu: 0.0.40
codegen_flags: <defaults>
</compile_context>

<pallas_src>
import numpy as np
import jax
import jax.numpy as jnp
from jax.experimental import pallas as pl
from jax.experimental.pallas import tpu as pltpu


def _round_up(n, m):
    return ((n + m - 1) // m) * m


def make_pscn_kernel(depth, output_dim):
    """Fused kernel: all `depth` Linear+PReLU layers, splits and the final concat
    are done per batch tile; one lane-dense store to the output tile."""

    def kernel(*refs):
        x_ref = refs[0]                              # (TILE_B, input_dim) bf16
        w_refs = refs[1:1 + depth]                   # (in_i, out_i) bf16, VMEM-resident
        b_refs = refs[1 + depth:1 + 2 * depth]       # (1, out_i) f32
        a_ref = refs[1 + 2 * depth]                  # (1,) f32 in SMEM: PReLU slope
        o_ref = refs[2 + 2 * depth]                  # (TILE_B, output_dim) f32
        a = a_ref[0]

        x = x_ref[...]                               # bf16
        parts = []
        for i in range(depth):
            # MXU matmul in bf16 with f32 accumulation; epilogue in f32.
            y = jnp.dot(x, w_refs[i][...], preferred_element_type=jnp.float32)
            y = y + b_refs[i][...]                   # (1, out) broadcasts over batch
            y = jnp.where(y >= 0.0, y, a * y)        # PReLU (shared scalar slope)
            if i < depth - 1:
                split = output_dim // (2 ** (i + 1))
                parts.append(y[:, :split])           # emit first half
                x = y[:, split:].astype(jnp.bfloat16)  # cascade second half
            else:
                parts.append(y)                      # last layer: full output
        # Single lane-dense store of the whole row instead of 3 masked slice-stores.
        o_ref[...] = jnp.concatenate(parts, axis=-1).astype(o_ref.dtype)

    return kernel


def pscn_forward(x, weights, biases, prelu_a, output_dim, tile_b=512):
    """x: (B, input_dim) f32.  weights[i]: (in_i, out_i) f32 (transposed vs PyTorch).
    biases[i]: (1, out_i) f32.  prelu_a: (1,) f32 shared PReLU slope."""
    depth = len(weights)
    B, input_dim = x.shape

    # Batch tile: multiple of 8 sublanes, no bigger than the (padded) batch.
    tile_b = max(8, _round_up(min(tile_b, _round_up(B, 8)), 8))
    B_pad = _round_up(B, tile_b)

    x_bf16 = x.astype(jnp.bfloat16)
    if B_pad != B:
        x_bf16 = jnp.pad(x_bf16, ((0, B_pad - B), (0, 0)))
    w_bf16 = [w.astype(jnp.bfloat16) for w in weights]
    b_f32 = [b.astype(jnp.float32) for b in biases]

    kernel = make_pscn_kernel(depth, output_dim)
    grid = (B_pad // tile_b,)

    def const_spec(shape):
        n = len(shape)
        return pl.BlockSpec(shape, lambda i, _n=n: (0,) * _n)

    in_specs = (
        [pl.BlockSpec((tile_b, input_dim), lambda i: (i, 0))]          # x: tiled over batch
        + [const_spec(w.shape) for w in w_bf16]                        # weights: resident
        + [const_spec(b.shape) for b in b_f32]                         # biases: resident
        + [pl.BlockSpec((1,), lambda i: (0,),
                        memory_space=pltpu.MemorySpace.SMEM)]          # PReLU scalar
    )
    out_specs = pl.BlockSpec((tile_b, output_dim), lambda i: (i, 0))

    out = pl.pallas_call(
        kernel,
        out_shape=jax.ShapeDtypeStruct((B_pad, output_dim), jnp.float32),
        grid=grid,
        in_specs=in_specs,
        out_specs=out_specs,
        compiler_params=pltpu.CompilerParams(
            dimension_semantics=("parallel",),      # shards batch tiles across TCs on v7x
            vmem_limit_bytes=32 * 1024 * 1024,      # conservative: fits v7x's 64 MiB VMEM
        ),
    )(x_bf16, *w_bf16, *b_f32, prelu_a)
    return out[:B]


def init_pscn_params(key, input_dim, output_dim, depth):
    """Deterministic synthetic init (kaiming-uniform-like weights, zero bias),
    matching the layer shapes produced by PSCN.__init__."""
    weights, biases = [], []
    in_dim, out_dim = input_dim, output_dim
    for _ in range(depth):
        key, wk = jax.random.split(key)
        bound = float(np.sqrt(6.0 / in_dim))
        w = jax.random.uniform(wk, (in_dim, out_dim), jnp.float32, -bound, bound)
        b = jnp.zeros((1, out_dim), jnp.float32)
        weights.append(w)
        biases.append(b)
        in_dim = out_dim // 2
        out_dim //= 2
    return weights, biases


def pscn_reference(x, weights, biases, a, output_dim):
    """Pure-JAX f32 reference mirroring the PyTorch forward."""
    parts = []
    depth = len(weights)
    for i in range(depth):
        y = x @ weights[i] + biases[i]
        y = jnp.where(y >= 0.0, y, a * y)
        if i < depth - 1:
            split = output_dim // 2 ** (i + 1)
            parts.append(y[:, :split])
            x = y[:, split:]
        else:
            parts.append(y)
    return jnp.concatenate(parts, axis=-1)


if __name__ == "__main__":
    # Shapes consistent with the module: PSCN(input_dim=48, output_dim=32, depth=3)
    INPUT_DIM, OUTPUT_DIM, DEPTH = 48, 32, 3

    key = jax.random.PRNGKey(0)
    key, xk1, xk2 = jax.random.split(key, 3)
    weights, biases = init_pscn_params(key, INPUT_DIM, OUTPUT_DIM, DEPTH)
    prelu_a = jnp.array([0.25], dtype=jnp.float32)   # PyTorch PReLU default init

    # Primary small-shape run (as required by the harness).
    B = 8
    x = jax.random.normal(xk1, (B, INPUT_DIM), dtype=jnp.float32)
    out = pscn_forward(x, weights, biases, prelu_a, OUTPUT_DIM)
    out = jax.block_until_ready(out)
    ref = pscn_reference(x, weights, biases, 0.25, OUTPUT_DIM)
    # bf16 matmul inputs -> loose tolerance vs f32 reference.
    np.testing.assert_allclose(np.asarray(out), np.asarray(ref), rtol=2e-2, atol=5e-2)
    assert out.shape == (B, OUTPUT_DIM)

    # Secondary run exercising the batch grid + remainder padding (B % tile_b != 0).
    B2 = 200
    x2 = jax.random.normal(xk2, (B2, INPUT_DIM), dtype=jnp.float32)
    out2 = jax.block_until_ready(
        pscn_forward(x2, weights, biases, prelu_a, OUTPUT_DIM, tile_b=64))
    ref2 = pscn_reference(x2, weights, biases, 0.25, OUTPUT_DIM)
    np.testing.assert_allclose(np.asarray(out2), np.asarray(ref2), rtol=2e-2, atol=5e-2)
    assert out2.shape == (B2, OUTPUT_DIM)

    print("KERNEL_OK")
</pallas_src>

<mosaic_0001>
module attributes {stable_mosaic.version = 11 : i64} {
  func.func @kernel(%arg0: i32, %arg1: memref<8x48xbf16, #tpu.memory_space<vmem>>, %arg2: memref<48x32xbf16, #tpu.memory_space<vmem>>, %arg3: memref<16x16xbf16, #tpu.memory_space<vmem>>, %arg4: memref<8x8xbf16, #tpu.memory_space<vmem>>, %arg5: memref<1x32xf32, #tpu.memory_space<vmem>>, %arg6: memref<1x16xf32, #tpu.memory_space<vmem>>, %arg7: memref<1x8xf32, #tpu.memory_space<vmem>>, %arg8: memref<1xf32, #tpu.memory_space<smem>>, %arg9: memref<8x32xf32, #tpu.memory_space<vmem>>) attributes {dimension_semantics = [#tpu.dimension_semantics<parallel>], iteration_bounds = array<i64: 1>, scalar_prefetch = 0 : i64, scratch_operands = 0 : i64, tpu.core_type = #tpu.core_type<tc>, window_params = [{transform_indices = @transform_0, window_bounds = array<i64: 8, 48>}, {pipeline_mode = #tpu.pipeline_mode<synchronous>, transform_indices = @transform_1, window_bounds = array<i64: 48, 32>}, {pipeline_mode = #tpu.pipeline_mode<synchronous>, transform_indices = @transform_2, window_bounds = array<i64: 16, 16>}, {pipeline_mode = #tpu.pipeline_mode<synchronous>, transform_indices = @transform_3, window_bounds = array<i64: 8, 8>}, {pipeline_mode = #tpu.pipeline_mode<synchronous>, transform_indices = @transform_4, window_bounds = array<i64: 1, 32>}, {pipeline_mode = #tpu.pipeline_mode<synchronous>, transform_indices = @transform_5, window_bounds = array<i64: 1, 16>}, {pipeline_mode = #tpu.pipeline_mode<synchronous>, transform_indices = @transform_6, window_bounds = array<i64: 1, 8>}, {transform_indices = @transform_7, window_bounds = array<i64: 1>}, {transform_indices = @transform_8, window_bounds = array<i64: 8, 32>}]} {
    %c0 = arith.constant 0 : index
    %0 = memref.load %arg8[%c0] : memref<1xf32, #tpu.memory_space<smem>>
    %c0_0 = arith.constant 0 : index
    %c0_1 = arith.constant 0 : index
    %1 = vector.load %arg1[%c0_0, %c0_1] : memref<8x48xbf16, #tpu.memory_space<vmem>>, vector<8x48xbf16>
    %c0_2 = arith.constant 0 : index
    %c0_3 = arith.constant 0 : index
    %2 = vector.load %arg2[%c0_2, %c0_3] : memref<48x32xbf16, #tpu.memory_space<vmem>>, vector<48x32xbf16>
    %cst = arith.constant dense<0.000000e+00> : vector<8x32xf32>
    %3 = tpu.matmul %1, %2, %cst {dimension_numbers = #tpu.dot_dimension_numbers<[1], [0], [0], [1], [0, 0, 1, 1], [], []>} : vector<8x48xbf16>, vector<48x32xbf16>, vector<8x32xf32> -> vector<8x32xf32>
    %c0_4 = arith.constant 0 : index
    %c0_5 = arith.constant 0 : index
    %4 = vector.load %arg5[%c0_4, %c0_5] : memref<1x32xf32, #tpu.memory_space<vmem>>, vector<1x32xf32>
    %5 = vector.broadcast %4 : vector<1x32xf32> to vector<8x32xf32>
    %6 = arith.addf %3, %5 : vector<8x32xf32>
    %cst_6 = arith.constant 0.000000e+00 : f32
    %7 = vector.broadcast %cst_6 : f32 to vector<8x32xf32>
    %8 = arith.cmpf oge, %6, %7 : vector<8x32xf32>
    %9 = vector.broadcast %0 : f32 to vector<8x32xf32>
    %10 = arith.mulf %9, %6 : vector<8x32xf32>
    %11 = arith.select %8, %6, %10 : vector<8x32xi1>, vector<8x32xf32>
    %12 = vector.extract_strided_slice %11 {offsets = [0, 0], sizes = [8, 16], strides = [1, 1]} : vector<8x32xf32> to vector<8x16xf32>
    %13 = vector.extract_strided_slice %11 {offsets = [0, 16], sizes = [8, 16], strides = [1, 1]} : vector<8x32xf32> to vector<8x16xf32>
    %14 = arith.truncf %13 : vector<8x16xf32> to vector<8x16xbf16>
    %c0_7 = arith.constant 0 : index
    %c0_8 = arith.constant 0 : index
    %15 = vector.load %arg3[%c0_7, %c0_8] : memref<16x16xbf16, #tpu.memory_space<vmem>>, vector<16x16xbf16>
    %cst_9 = arith.constant dense<0.000000e+00> : vector<8x16xf32>
    %16 = tpu.matmul %14, %15, %cst_9 {dimension_numbers = #tpu.dot_dimension_numbers<[1], [0], [0], [1], [0, 0, 1, 1], [], []>} : vector<8x16xbf16>, vector<16x16xbf16>, vector<8x16xf32> -> vector<8x16xf32>
    %c0_10 = arith.constant 0 : index
    %c0_11 = arith.constant 0 : index
    %17 = vector.load %arg6[%c0_10, %c0_11] : memref<1x16xf32, #tpu.memory_space<vmem>>, vector<1x16xf32>
    %18 = vector.broadcast %17 : vector<1x16xf32> to vector<8x16xf32>
    %19 = arith.addf %16, %18 : vector<8x16xf32>
    %cst_12 = arith.constant 0.000000e+00 : f32
    %20 = vector.broadcast %cst_12 : f32 to vector<8x16xf32>
    %21 = arith.cmpf oge, %19, %20 : vector<8x16xf32>
    %22 = vector.broadcast %0 : f32 to vector<8x16xf32>
    %23 = arith.mulf %22, %19 : vector<8x16xf32>
    %24 = arith.select %21, %19, %23 : vector<8x16xi1>, vector<8x16xf32>
    %25 = vector.extract_strided_slice %24 {offsets = [0, 0], sizes = [8, 8], strides = [1, 1]} : vector<8x16xf32> to vector<8x8xf32>
    %26 = vector.extract_strided_slice %24 {offsets = [0, 8], sizes = [8, 8], strides = [1, 1]} : vector<8x16xf32> to vector<8x8xf32>
    %27 = arith.truncf %26 : vector<8x8xf32> to vector<8x8xbf16>
    %c0_13 = arith.constant 0 : index
    %c0_14 = arith.constant 0 : index
    %28 = vector.load %arg4[%c0_13, %c0_14] : memref<8x8xbf16, #tpu.memory_space<vmem>>, vector<8x8xbf16>
    %cst_15 = arith.constant dense<0.000000e+00> : vector<8x8xf32>
    %29 = tpu.matmul %27, %28, %cst_15 {dimension_numbers = #tpu.dot_dimension_numbers<[1], [0], [0], [1], [0, 0, 1, 1], [], []>} : vector<8x8xbf16>, vector<8x8xbf16>, vector<8x8xf32> -> vector<8x8xf32>
    %c0_16 = arith.constant 0 : index
    %c0_17 = arith.constant 0 : index
    %30 = vector.load %arg7[%c0_16, %c0_17] : memref<1x8xf32, #tpu.memory_space<vmem>>, vector<1x8xf32>
    %31 = vector.broadcast %30 : vector<1x8xf32> to vector<8x8xf32>
    %32 = arith.addf %29, %31 : vector<8x8xf32>
    %cst_18 = arith.constant 0.000000e+00 : f32
    %33 = vector.broadcast %cst_18 : f32 to vector<8x8xf32>
    %34 = arith.cmpf oge, %32, %33 : vector<8x8xf32>
    %35 = vector.broadcast %0 : f32 to vector<8x8xf32>
    %36 = arith.mulf %35, %32 : vector<8x8xf32>
    %37 = arith.select %34, %32, %36 : vector<8x8xi1>, vector<8x8xf32>
    %38 = tpu.concatenate %12, %25, %37 in 1 : vector<8x16xf32>, vector<8x8xf32>, vector<8x8xf32> -> vector<8x32xf32>
    %c0_19 = arith.constant 0 : index
    %c0_20 = arith.constant 0 : index
    %39 = vector.load %arg9[%c0_19, %c0_20] : memref<8x32xf32, #tpu.memory_space<vmem>>, vector<8x32xf32>
    tpu.vector_store %arg9[%c0_19, %c0_20], %38 {strides = array<i32>} : memref<8x32xf32, #tpu.memory_space<vmem>>, vector<8x32xf32>,
    return
  }
  func.func @transform_0(%arg0: i32) -> (i32, i32) {
    %c0_i32 = arith.constant 0 : i32
    %c0_i32_0 = arith.constant 0 : i32
    return %arg0, %c0_i32 : i32, i32
  }
  func.func @transform_1(%arg0: i32) -> (i32, i32) {
    %c0_i32 = arith.constant 0 : i32
    %c0_i32_0 = arith.constant 0 : i32
    %c0_i32_1 = arith.constant 0 : i32
    return %c0_i32, %c0_i32_0 : i32, i32
  }
  func.func @transform_2(%arg0: i32) -> (i32, i32) {
    %c0_i32 = arith.constant 0 : i32
    %c0_i32_0 = arith.constant 0 : i32
    %c0_i32_1 = arith.constant 0 : i32
    return %c0_i32, %c0_i32_0 : i32, i32
  }
  func.func @transform_3(%arg0: i32) -> (i32, i32) {
    %c0_i32 = arith.constant 0 : i32
    %c0_i32_0 = arith.constant 0 : i32
    %c0_i32_1 = arith.constant 0 : i32
    return %c0_i32, %c0_i32_0 : i32, i32
  }
  func.func @transform_4(%arg0: i32) -> (i32, i32) {
    %c0_i32 = arith.constant 0 : i32
    %c0_i32_0 = arith.constant 0 : i32
    %c0_i32_1 = arith.constant 0 : i32
    return %c0_i32, %c0_i32_0 : i32, i32
  }
  func.func @transform_5(%arg0: i32) -> (i32, i32) {
    %c0_i32 = arith.constant 0 : i32
    %c0_i32_0 = arith.constant 0 : i32
    %c0_i32_1 = arith.constant 0 : i32
    return %c0_i32, %c0_i32_0 : i32, i32
  }
  func.func @transform_6(%arg0: i32) -> (i32, i32) {
    %c0_i32 = arith.constant 0 : i32
    %c0_i32_0 = arith.constant 0 : i32
    %c0_i32_1 = arith.constant 0 : i32
    return %c0_i32, %c0_i32_0 : i32, i32
  }
  func.func @transform_7(%arg0: i32) -> i32 {
    %c0_i32 = arith.constant 0 : i32
    %c0_i32_0 = arith.constant 0 : i32
    return %c0_i32 : i32
  }
  func.func @transform_8(%arg0: i32) -> (i32, i32) {
    %c0_i32 = arith.constant 0 : i32
    %c0_i32_0 = arith.constant 0 : i32
    return %arg0, %c0_i32 : i32, i32
  }
}

</mosaic_0001>

<bundles_post_ra>
// kernel: tpu_custom_call.1
= control target key start
LH: loop header
LB: loop body
LE: loop exit
PB: predicated region body
PF: predicated region fallthrough
CT: control target
= control target key end

     0   :  { %s323_s0 = inlined_call_operand.vmem [shape: bf16[8,48], index: 0, kind: input, shape index: {}]   ;;  %s324_s1 = inlined_call_operand.vmem [shape: bf16[48,32], index: 1, kind: input, shape index: {}]   ;;  %s325_s2 = inlined_call_operand.vmem [shape: bf16[16,16], index: 2, kind: input, shape index: {}]   ;;  %s326_s3 = inlined_call_operand.vmem [shape: bf16[8,8], index: 3, kind: input, shape index: {}]   ;;  %s327_s4 = inlined_call_operand.vmem [shape: f32[1,32], index: 4, kind: input, shape index: {}]   ;;  %s328_s5 = inlined_call_operand.vmem [shape: f32[1,16], index: 5, kind: input, shape index: {}]   ;;  %s329_s6 = inlined_call_operand.vmem [shape: f32[1,8], index: 6, kind: input, shape index: {}]   ;;  %s330_s7 = inlined_call_operand.<no memory space> [shape: f32[1], index: 7, kind: input, shape index: {}]   ;;  %s331_s8 = inlined_call_operand.hbm [shape: f32[8,32], index: 8, kind: output, shape index: {}]  }
   0x1   :  { %v202_v0 = vld [vmem:[%s324_s1 + $0x10] sm:$0xff]  ;;  %v201_v1 = vld [vmem:[%s324_s1 + $0x8] sm:$0xff] }
   0x2   :  { %71 = vmatpush.bf16.msra.mxu0 %v202_v0 }
   0x3   :  { %14 = vsyncpa [#allocation4], 0  ;;  %v200_v2 = vld [vmem:[%s324_s1] sm:$0xff]  ;;  %vm62_vm0 = vcmask 392192   ;;  %v80_v7 = vstv %s330_s7  ;;  %vm99_vm2 = vcmask 130048   ;;  %vm132_vm3 = vcmask 1043456  }
   0x4   :  { %v33_v3 = vld [vmem:[%s323_s0] sm:$0xf]  ;;  %s238_s0 = smov 112   ;;  %s239_s19 = smov 16   ;;  %vm128_vm5 = vcmask 64512   ;;  %vm161_vm7 = vcmask 195584  }
   0x5   :  { %v203_v4 = vld [vmem:[%s325_s2] sm:$0xff]  ;;  %s240_s20 = smov 120   ;;  %s242_s22 = smov [#allocation3]   ;;  %vm163_vm8 = vcmask 261120  }
   0x6   :  { %72 = vmatpush.bf16.msra.mxu0 %v201_v1  ;;  %110 = vmatpush.bf16.msra.mxu1 %v203_v4  ;;  %v209_v5 = vld [vmem:[%s327_s4] ss:$0 sm:$0xff]  ;;  %s170_s23 = sshll.u32 %s242_s22, 4  ;;  %s172_s26 = sshll.u32 %s331_s8, 4  ;;  %s171_s23 = int_to_ptr.vmem [resolvable:$true] %s170_s23  ;;  %s173_s26 = int_to_ptr.hbm [resolvable:$true] %s172_s26 }
   0x7   :  { %v120_v14 = vld [vmem:[%s326_s3] sm:$0xf] }
   0x8   :  { %v134_v15 = vsel %vm132_vm3, %v120_v14, 0  ;;  %v210_v16 = vld [vmem:[%s328_s5] ss:$0 sm:$0xff]  ;;  %s241_s5 = smov 24  }
   0x9   :  { %143 = vmatpush.bf16.msra.mxu2 %v134_v15  ;;  %v211_v24 = vld [vmem:[%s329_s6] ss:$0 sm:$0xff] }
   0xa   :  { %73 = vmatpush.bf16.msra.mxu0 %v200_v2 }
   0xd   :  { %193 = vmatmul.msk.bf16.vlgmr.msra.gmra.mxu0 %vm62_vm0, %v33_v3 }
  0x8a   :  { %v75_v6 = vpop.f32.mrf.mxu0 }
  0x8b   :  { %v76_v8 = vadd.f32 %v209_v5, %v75_v6 }
  0x8d   :  { %v81_v9 = vmul.f32 %v80_v7, %v76_v8  ;;  %vm79_vm1 = vcmp.ge.f32.partialorder %v76_v8, 0.0 }
  0x8f   :  { %v82_v10 = vsel %vm79_vm1, %v76_v8, %v81_v9 }
  0x90   :  { %v83_v11 = vpack.c.bf16 %v82_v10, %v82_v10 }
  0x92   :  { %v77_v12 = vpop.f32.mrf.mxu0  ;;  %91 = vrot.lane.b32.xlu0 %v83_v11, %s238_s0 }
 0x104   :  { %v92_v13 = vpop.permute.xlu0 %91 }
 0x105   :  { %198 = vmatmul.msk.bf16.vlgmr.msra.gmra.mxu1 %vm99_vm2, %v92_v13 }
 0x182   :  { %v112_v17 = vpop.f32.mrf.mxu1 }
 0x183   :  { %v113_v18 = vadd.f32 %v210_v16, %v112_v17 }
 0x185   :  { %vm116_vm4 = vcmp.ge.f32.partialorder %v113_v18, 0.0  ;;  %v117_v19 = vmul.f32 %v113_v18, %v80_v7 }
 0x187   :  { %v118_v20 = vsel %vm116_vm4, %v113_v18, %v117_v19 }
 0x188   :  { %153 = vrot.lane.b32.xlu1 %v118_v20, %s239_s19  ;;  %v119_v21 = vpack.c.bf16 %v118_v20, %v118_v20 }
 0x18a   :  { %v114_v22 = vpop.f32.mrf.mxu1  ;;  %126 = vrot.lane.b32.xlu0 %v119_v21, %s240_s20 }
 0x1fa   :  { %v154_v30 = vpop.permute.xlu1 %153 }
 0x1fb   :  { %v160_v31 = vsel %vm99_vm2, %v82_v10, %v154_v30 }
 0x1fc   :  { %v127_v23 = vpop.permute.xlu0 %126 }
 0x1fd   :  { %199 = vmatmul.msk.bf16.vlgmr.msra.gmra.mxu2 %vm128_vm5, %v127_v23 }
 0x280   :  { %v145_v25 = vpop.f32.mrf.mxu2 }
 0x281   :  { %v146_v26 = vadd.f32 %v211_v24, %v145_v25 }
 0x283   :  { %v150_v27 = vmul.f32 %v146_v26, %v80_v7  ;;  %vm149_vm6 = vcmp.ge.f32.partialorder %v146_v26, 0.0 }
 0x285   :  { %v151_v28 = vsel %vm149_vm6, %v146_v26, %v150_v27 }
 0x286   :  { %157 = vrot.lane.b32.xlu1 %v151_v28, %s241_s5 }
 0x288   :  { %v147_v29 = vpop.f32.mrf.mxu2 }
 0x2f8   :  { %v158_v32 = vpop.permute.xlu1 %157 }
 0x2f9   :  { %v162_v33 = vsel %vm161_vm7, %v160_v31, %v158_v32 }
 0x2fa   :  { %164 = vst.msk [vmem:[#allocation3] sm:$0xff] %vm163_vm8, %v162_v33 }
 0x2fb   :  { %175 = dma.vmem_to_hbm [thread:$0]  %s171_s23, 128, %s173_s26, [#allocation4]  }
 0x2fc   :  { %236 = dma.done.wait [#allocation4], 128  }
 0x2fd   :  { %237 = vsyncadd [#allocation4], 4294967168 }
 0x2fe   :  { %180 = vsyncpa [#allocation4], 1 }

</bundles_post_ra>
